<compile_context>
chip_gen: v6e
topology: v6e:2x2x1
jax: 0.10.0
libtpu: 0.0.40
codegen_flags: <defaults>
</compile_context>

<pallas_src>
import jax
import jax.numpy as jnp
from jax.experimental import pallas as pl
from jax.experimental.pallas import tpu as pltpu


def _round_up(x, m):
    return (x + m - 1) // m * m


def _pick_tile(dim, max_tile, align):
    """Largest tile <= max_tile (multiple of `align`) that minimizes padding of `dim`."""
    dim_p = _round_up(dim, align)
    if dim_p <= max_tile:
        return dim_p
    best_t, best_pad = None, None
    for t in range(max_tile, align - 1, -align):
        padded = _round_up(dim_p, t)
        if best_pad is None or padded < best_pad:
            best_t, best_pad = t, padded
    return best_t


def _gelu_tanh(y):
    # tanh-approximated GELU (EUP tanh), matches jax.nn.gelu(approximate=True).
    # TODO(synk): swap in exact erf-GELU if config.hidden_act requires the erf form.
    c = 0.7978845608028654  # sqrt(2/pi)
    return 0.5 * y * (1.0 + jnp.tanh(c * (y + 0.044715 * (y * y * y))))


def _dense_gelu_kernel(x_ref, w_ref, b_ref, o_ref):
    """Single K-step: whole contraction in one tile, no scratch accumulator."""
    y = jnp.dot(x_ref[...], w_ref[...], preferred_element_type=jnp.float32)
    y = y + b_ref[...].astype(jnp.float32)  # (tm, tn) + (1, tn)
    o_ref[...] = _gelu_tanh(y).astype(o_ref.dtype)


def _dense_gelu_acc_kernel(x_ref, w_ref, b_ref, o_ref, acc_ref):
    """Multi K-step: f32 VMEM accumulator, bias + GELU fused into the last step."""
    k = pl.program_id(2)

    @pl.when(k == 0)
    def _init():
        acc_ref[...] = jnp.zeros_like(acc_ref)

    acc_ref[...] += jnp.dot(
        x_ref[...], w_ref[...], preferred_element_type=jnp.float32
    )

    @pl.when(k == pl.num_programs(2) - 1)
    def _finalize():
        y = acc_ref[...] + b_ref[...].astype(jnp.float32)
        o_ref[...] = _gelu_tanh(y).astype(o_ref.dtype)


def rnabert_intermediate(x, weight, bias, *, tm=256, tn=256, tk=512):
    """y = gelu(x @ weight.T + bias).

    weight: (intermediate_size, hidden_size) — PyTorch nn.Linear layout.
    bias:   (intermediate_size,)
    """
    orig_shape = x.shape
    K = orig_shape[-1]
    M = 1
    for d in orig_shape[:-1]:
        M *= d
    N = weight.shape[0]

    x2 = x.reshape(M, K)
    wT = jnp.transpose(weight)  # (K, N): N lands on the lane axis of the output
    b2 = bias.reshape(1, N)

    # Tile sizes: as large as requested, clipped to the padded problem, chosen to
    # minimize zero-padding; lane-dense (128) on K/N, sublane-aligned (8) on M.
    tm_eff = _pick_tile(M, tm, 8)
    tn_eff = _pick_tile(N, tn, 128)
    tk_eff = _pick_tile(K, tk, 128)

    Mp = _round_up(M, tm_eff)
    Np = _round_up(N, tn_eff)
    Kp = _round_up(K, tk_eff)

    # Zero-padding keeps the matmul exact; padded output columns are sliced off.
    if (Mp, Kp) != (M, K):
        x2 = jnp.pad(x2, ((0, Mp - M), (0, Kp - K)))
    if (Kp, Np) != (K, N):
        wT = jnp.pad(wT, ((0, Kp - K), (0, Np - N)))
    if Np != N:
        b2 = jnp.pad(b2, ((0, 0), (0, Np - N)))

    nk = Kp // tk_eff
    compiler_common = dict(vmem_limit_bytes=32 * 1024 * 1024)

    if nk == 1:
        # Fast path: whole contraction in one tile -> no accumulator scratch.
        grid = (Mp // tm_eff, Np // tn_eff)
        out = pl.pallas_call(
            _dense_gelu_kernel,
            out_shape=jax.ShapeDtypeStruct((Mp, Np), x.dtype),
            grid_spec=pltpu.PrefetchScalarGridSpec(
                num_scalar_prefetch=0,
                grid=grid,
                in_specs=[
                    pl.BlockSpec((tm_eff, Kp), lambda i, j: (i, 0)),
                    pl.BlockSpec((Kp, tn_eff), lambda i, j: (0, j)),
                    pl.BlockSpec((1, tn_eff), lambda i, j: (0, j)),
                ],
                out_specs=pl.BlockSpec((tm_eff, tn_eff), lambda i, j: (i, j)),
            ),
            compiler_params=pltpu.CompilerParams(
                dimension_semantics=("parallel", "parallel"),
                **compiler_common,
            ),
        )(x2, wT, b2)
    else:
        grid = (Mp // tm_eff, Np // tn_eff, nk)
        out = pl.pallas_call(
            _dense_gelu_acc_kernel,
            out_shape=jax.ShapeDtypeStruct((Mp, Np), x.dtype),
            grid_spec=pltpu.PrefetchScalarGridSpec(
                num_scalar_prefetch=0,
                grid=grid,
                in_specs=[
                    pl.BlockSpec((tm_eff, tk_eff), lambda i, j, k: (i, k)),
                    pl.BlockSpec((tk_eff, tn_eff), lambda i, j, k: (k, j)),
                    pl.BlockSpec((1, tn_eff), lambda i, j, k: (0, j)),
                ],
                out_specs=pl.BlockSpec((tm_eff, tn_eff), lambda i, j, k: (i, j)),
                scratch_shapes=[pltpu.VMEM((tm_eff, tn_eff), jnp.float32)],
            ),
            compiler_params=pltpu.CompilerParams(
                dimension_semantics=("parallel", "parallel", "arbitrary"),
                **compiler_common,
            ),
        )(x2, wT, b2)

    out = out[:M, :N]
    return out.reshape(orig_shape[:-1] + (N,))


if __name__ == "__main__":
    batch, seq, hidden, intermediate = 2, 8, 32, 64
    key = jax.random.PRNGKey(0)
    kx, kw, kb = jax.random.split(key, 3)

    x = jax.random.normal(kx, (batch, seq, hidden), dtype=jnp.float32)
    # BERT-style small init (initializer_range ~ 0.02)
    weight = 0.02 * jax.random.normal(kw, (intermediate, hidden), dtype=jnp.float32)
    bias = 0.02 * jax.random.normal(kb, (intermediate,), dtype=jnp.float32)

    out = rnabert_intermediate(x, weight, bias)
    out = jax.block_until_ready(out)

    # Reference: dense + tanh-approx GELU in plain JAX (high-precision matmul).
    y = (
        jnp.dot(
            x.reshape(-1, hidden), weight.T, precision=jax.lax.Precision.HIGHEST
        )
        + bias
    )
    ref = jax.nn.gelu(y, approximate=True).reshape(batch, seq, intermediate)

    assert out.shape == ref.shape, f"shape mismatch {out.shape} vs {ref.shape}"
    assert jnp.allclose(out, ref, atol=2e-3, rtol=2e-3), "mismatch vs reference"

    # Also exercise the multi-K-step (accumulator) path with a larger hidden size.
    hidden2, intermediate2, m2 = 384, 512, 64
    k2x, k2w, k2b = jax.random.split(jax.random.PRNGKey(1), 3)
    x2 = jax.random.normal(k2x, (m2, hidden2), dtype=jnp.float32)
    w2 = 0.02 * jax.random.normal(k2w, (intermediate2, hidden2), dtype=jnp.float32)
    b2 = 0.02 * jax.random.normal(k2b, (intermediate2,), dtype=jnp.float32)
    out2 = jax.block_until_ready(rnabert_intermediate(x2, w2, b2, tk=256))
    ref2 = jax.nn.gelu(
        jnp.dot(x2, w2.T, precision=jax.lax.Precision.HIGHEST) + b2,
        approximate=True,
    )
    assert jnp.allclose(out2, ref2, atol=2e-3, rtol=2e-3), "mismatch (acc path)"

    print("KERNEL_OK")
</pallas_src>

<mosaic_0001>
module attributes {stable_mosaic.version = 11 : i64} {
  func.func @_dense_gelu_kernel(%arg0: i32, %arg1: i32, %arg2: memref<16x128xf32, #tpu.memory_space<vmem>>, %arg3: memref<128x128xf32, #tpu.memory_space<vmem>>, %arg4: memref<1x128xf32, #tpu.memory_space<vmem>>, %arg5: memref<16x128xf32, #tpu.memory_space<vmem>>) attributes {dimension_semantics = [#tpu.dimension_semantics<parallel>, #tpu.dimension_semantics<parallel>], iteration_bounds = array<i64: 1, 1>, scalar_prefetch = 0 : i64, scratch_operands = 0 : i64, tpu.core_type = #tpu.core_type<tc>, window_params = [{transform_indices = @transform_0, window_bounds = array<i64: 16, 128>}, {transform_indices = @transform_1, window_bounds = array<i64: 128, 128>}, {transform_indices = @transform_2, window_bounds = array<i64: 1, 128>}, {transform_indices = @transform_3, window_bounds = array<i64: 16, 128>}]} {
    %c0 = arith.constant 0 : index
    %c0_0 = arith.constant 0 : index
    %0 = vector.load %arg2[%c0, %c0_0] : memref<16x128xf32, #tpu.memory_space<vmem>>, vector<16x128xf32>
    %c0_1 = arith.constant 0 : index
    %c0_2 = arith.constant 0 : index
    %1 = vector.load %arg3[%c0_1, %c0_2] : memref<128x128xf32, #tpu.memory_space<vmem>>, vector<128x128xf32>
    %cst = arith.constant dense<0.000000e+00> : vector<16x128xf32>
    %2 = tpu.matmul %0, %1, %cst {dimension_numbers = #tpu.dot_dimension_numbers<[1], [0], [0], [1], [0, 0, 1, 1], [], []>} : vector<16x128xf32>, vector<128x128xf32>, vector<16x128xf32> -> vector<16x128xf32>
    %c0_3 = arith.constant 0 : index
    %c0_4 = arith.constant 0 : index
    %3 = vector.load %arg4[%c0_3, %c0_4] : memref<1x128xf32, #tpu.memory_space<vmem>>, vector<1x128xf32>
    %4 = vector.broadcast %3 : vector<1x128xf32> to vector<16x128xf32>
    %5 = arith.addf %2, %4 : vector<16x128xf32>
    %cst_5 = arith.constant 5.000000e-01 : f32
    %6 = vector.broadcast %cst_5 : f32 to vector<16x128xf32>
    %7 = arith.mulf %6, %5 : vector<16x128xf32>
    %8 = arith.mulf %5, %5 : vector<16x128xf32>
    %9 = arith.mulf %8, %5 : vector<16x128xf32>
    %cst_6 = arith.constant 4.471500e-02 : f32
    %10 = vector.broadcast %cst_6 : f32 to vector<16x128xf32>
    %11 = arith.mulf %10, %9 : vector<16x128xf32>
    %12 = arith.addf %5, %11 : vector<16x128xf32>
    %cst_7 = arith.constant 0.797884583 : f32
    %13 = vector.broadcast %cst_7 : f32 to vector<16x128xf32>
    %14 = arith.mulf %13, %12 : vector<16x128xf32>
    %15 = math.tanh %14 : vector<16x128xf32>
    %cst_8 = arith.constant 1.000000e+00 : f32
    %16 = vector.broadcast %cst_8 : f32 to vector<16x128xf32>
    %17 = arith.addf %16, %15 : vector<16x128xf32>
    %18 = arith.mulf %7, %17 : vector<16x128xf32>
    %c0_9 = arith.constant 0 : index
    %c0_10 = arith.constant 0 : index
    %19 = vector.load %arg5[%c0_9, %c0_10] : memref<16x128xf32, #tpu.memory_space<vmem>>, vector<16x128xf32>
    tpu.vector_store %arg5[%c0_9, %c0_10], %18 {strides = array<i32>} : memref<16x128xf32, #tpu.memory_space<vmem>>, vector<16x128xf32>,
    return
  }
  func.func @transform_0(%arg0: i32, %arg1: i32) -> (i32, i32) {
    %c0_i32 = arith.constant 0 : i32
    %c0_i32_0 = arith.constant 0 : i32
    return %arg0, %c0_i32 : i32, i32
  }
  func.func @transform_1(%arg0: i32, %arg1: i32) -> (i32, i32) {
    %c0_i32 = arith.constant 0 : i32
    %c0_i32_0 = arith.constant 0 : i32
    return %c0_i32, %arg1 : i32, i32
  }
  func.func @transform_2(%arg0: i32, %arg1: i32) -> (i32, i32) {
    %c0_i32 = arith.constant 0 : i32
    %c0_i32_0 = arith.constant 0 : i32
    return %c0_i32, %arg1 : i32, i32
  }
  func.func @transform_3(%arg0: i32, %arg1: i32) -> (i32, i32) {
    %c0_i32 = arith.constant 0 : i32
    return %arg0, %arg1 : i32, i32
  }
}

</mosaic_0001>

<bundles_post_ra>
// kernel: tpu_custom_call.1
= control target key start
LH: loop header
LB: loop body
LE: loop exit
PB: predicated region body
PF: predicated region fallthrough
CT: control target
= control target key end

     0   :  { %8 = vsyncpa [#allocation3], 0  ;;  %s356_s0 = inlined_call_operand.hbm [shape: f32[16,128], index: 0, kind: input, shape index: {}]   ;;  %s357_s1 = inlined_call_operand.hbm [shape: f32[128,128], index: 1, kind: input, shape index: {}]   ;;  %s358_s2 = inlined_call_operand.vmem [shape: f32[1,128], index: 2, kind: input, shape index: {}]   ;;  %s359_s3 = inlined_call_operand.hbm [shape: f32[16,128], index: 3, kind: output, shape index: {}]  }
   0x1   :  { %9 = vsyncpa [#allocation6], 0 }
   0x2   :  { %10 = vsyncpa [#allocation4], 0  ;;  %s310_s12 = smov [#allocation2]  }
   0x3   :  { %s16_s13 = sshll.u32 %s310_s12, 4  ;;  %s17_s13 = int_to_ptr.vmem [resolvable:$true] %s16_s13 }
   0x4   :  { %s252_s14 = scalar_lea.vmem %s17_s13, 256  ;;  %p257_p1 = scmp.lt.s32.totalorder %s17_s13, %s17_s13 }
   0x5   :  { %p253_p0 = scmp.ne.s32.totalorder %s17_s13, %s252_s14  ;;  %p258_p2 = scmp.lt.s32.totalorder %s252_s14, %s252_s14 }
   0x7   :  { %p259_p3 = por %p258_p2, %p257_p1 }
   0x9   :  { %p260_p4 = pnand %p259_p3, %p253_p0 }
   0xb   :  { %263 = shalt.err (!%p260_p4)
}
   0xc   :  { %s311_s15 = smov 128   ;;  %s312_s16 = smov 8  }
   0xd   :  { %22 = dma.hbm_to_vmem [thread:$0]  %s356_s0, 256, %s17_s13, [#allocation3], %s311_s15, %s311_s15, %s312_s16  }
   0xe   :  { %s313_s19 = smov [#allocation5]  }
   0xf   :  { %s28_s20 = sshll.u32 %s313_s19, 4  ;;  %s29_s20 = int_to_ptr.vmem [resolvable:$true] %s28_s20 }
  0x10   :  { %s272_s21 = scalar_lea.vmem %s29_s20, 2048  ;;  %p277_p6 = scmp.lt.s32.totalorder %s29_s20, %s29_s20 }
  0x11   :  { %p273_p5 = scmp.ne.s32.totalorder %s29_s20, %s272_s21  ;;  %p278_p7 = scmp.lt.s32.totalorder %s272_s21, %s272_s21 }
  0x13   :  { %p279_p8 = por %p278_p7, %p277_p6 }
  0x15   :  { %p280_p9 = pnand %p279_p8, %p273_p5 }
  0x17   :  { %283 = shalt.err (!%p280_p9)
}
  0x18   :  { %34 = dma.hbm_to_vmem [thread:$0]  %s357_s1, 2048, %s29_s20, [#allocation6], %s311_s15, %s311_s15, %s312_s16  }
  0x19   :  { %304 = dma.done.wait [#allocation3], 256  }
  0x1a   :  { %305 = vsyncadd [#allocation3], 4294967040 }
  0x1b   :  { %306 = dma.done.wait [#allocation6], 2048  }
  0x1c   :  { %307 = vsyncadd [#allocation6], 4294965248  ;;  %v60_v0 = vld [vmem:[#allocation5 + $0x78] sm:$0xff]  ;;  %v59_v1 = vld [vmem:[#allocation5 + $0x70] sm:$0xff] }
  0x1d   :  { %200 = vmatprep.subr.mxu0 %v60_v0  ;;  %v58_v2 = vld [vmem:[#allocation5 + $0x68] sm:$0xff]  ;;  %v57_v3 = vld [vmem:[#allocation5 + $0x60] sm:$0xff]  ;;  %v43_v4 = vld [vmem:[#allocation2] sm:$0xff] }
  0x1e   :  { %201 = vmatpush3.msra.mxu0 %v60_v0  ;;  %v56_v5 = vld [vmem:[#allocation5 + $0x58] sm:$0xff]  ;;  %232 = vmatprep.mubr.f32.mxu0 %v43_v4  ;;  %v55_v6 = vld [vmem:[#allocation5 + $0x50] sm:$0xff]  ;;  %v54_v7 = vld [vmem:[#allocation5 + $0x48] sm:$0xff] }
  0x1f   :  { %202 = vmatprep.subr.mxu0 %v59_v1  ;;  %v53_v8 = vld [vmem:[#allocation5 + $0x40] sm:$0xff]  ;;  %v52_v9 = vld [vmem:[#allocation5 + $0x38] sm:$0xff]  ;;  %v51_v10 = vld [vmem:[#allocation5 + $0x30] sm:$0xff] }
  0x20   :  { %203 = vmatpush3.msra.mxu0 %v59_v1  ;;  %v50_v11 = vld [vmem:[#allocation5 + $0x28] sm:$0xff]  ;;  %v49_v12 = vld [vmem:[#allocation5 + $0x20] sm:$0xff]  ;;  %v48_v13 = vld [vmem:[#allocation5 + $0x18] sm:$0xff] }
  0x21   :  { %204 = vmatprep.subr.mxu0 %v58_v2  ;;  %v47_v14 = vld [vmem:[#allocation5 + $0x10] sm:$0xff]  ;;  %v46_v15 = vld [vmem:[#allocation5 + $0x8] sm:$0xff]  ;;  %v45_v16 = vld [vmem:[#allocation5] sm:$0xff] }
  0x22   :  { %205 = vmatpush3.msra.mxu0 %v58_v2  ;;  %v44_v17 = vld [vmem:[#allocation2 + $0x8] sm:$0xff]  ;;  %v181_v18 = vld [vmem:[%s358_s2] ss:$0 sm:$0xff]  ;;  %s314_s2 = smov [#allocation7]  }
  0x23   :  { %206 = vmatprep.subr.mxu0 %v57_v3  ;;  %s168_s24 = sshll.u32 %s314_s2, 4  ;;  %s169_s24 = int_to_ptr.vmem [resolvable:$true] %s168_s24 }
  0x24   :  { %207 = vmatpush3.msra.mxu0 %v57_v3  ;;  %s284_s25 = scalar_lea.vmem %s169_s24, 256  ;;  %p289_p11 = scmp.lt.s32.totalorder %s169_s24, %s169_s24 }
  0x25   :  { %208 = vmatprep.subr.mxu0 %v56_v5  ;;  %p285_p10 = scmp.ne.s32.totalorder %s169_s24, %s284_s25  ;;  %p290_p12 = scmp.lt.s32.totalorder %s284_s25, %s284_s25 }
  0x26   :  { %209 = vmatpush3.msra.mxu0 %v56_v5 }
  0x27   :  { %210 = vmatprep.subr.mxu0 %v55_v6  ;;  %p291_p13 = por %p290_p12, %p289_p11 }
  0x28   :  { %211 = vmatpush3.msra.mxu0 %v55_v6 }
  0x29   :  { %212 = vmatprep.subr.mxu0 %v54_v7  ;;  %p292_p0 = pnand %p291_p13, %p285_p10 }
  0x2a   :  { %213 = vmatpush3.msra.mxu0 %v54_v7 }
  0x2b   :  { %214 = vmatprep.subr.mxu0 %v53_v8 }
  0x2c   :  { %215 = vmatpush3.msra.mxu0 %v53_v8 }
  0x2d   :  { %216 = vmatprep.subr.mxu0 %v52_v9 }
  0x2e   :  { %217 = vmatpush3.msra.mxu0 %v52_v9 }
  0x2f   :  { %218 = vmatprep.subr.mxu0 %v51_v10 }
  0x30   :  { %219 = vmatpush3.msra.mxu0 %v51_v10 }
  0x31   :  { %220 = vmatprep.subr.mxu0 %v50_v11 }
  0x32   :  { %221 = vmatpush3.msra.mxu0 %v50_v11 }
  0x33   :  { %222 = vmatprep.subr.mxu0 %v49_v12 }
  0x34   :  { %223 = vmatpush3.msra.mxu0 %v49_v12 }
  0x35   :  { %224 = vmatprep.subr.mxu0 %v48_v13 }
  0x36   :  { %225 = vmatpush3.msra.mxu0 %v48_v13 }
  0x37   :  { %226 = vmatprep.subr.mxu0 %v47_v14 }
  0x38   :  { %227 = vmatpush3.msra.mxu0 %v47_v14 }
  0x39   :  { %228 = vmatprep.subr.mxu0 %v46_v15 }
  0x3a   :  { %229 = vmatpush3.msra.mxu0 %v46_v15 }
  0x3b   :  { %230 = vmatprep.subr.mxu0 %v45_v16 }
  0x3c   :  { %231 = vmatpush3.msra.mxu0 %v45_v16 }
  0x3d   :  { %233 = vmatmul.mubr.f32.vlgmr.msra.gmra.mxu0 %v44_v17 }
  0xfd   :  { %v234_v19 = vpop.f32.mrf.mxu0 }
  0xfe   :  { %v140_v20 = vadd.f32 %v234_v19, %v181_v18 }
  0xff   :  { %v134_v21 = vpop.f32.mrf.mxu0 }
 0x100   :  { %v146_v22 = vmul.f32 %v140_v20, %v140_v20  ;;  %v135_v23 = vadd.f32 %v181_v18, %v134_v21  ;;  %v144_v34 = vmul.f32 0.5, %v140_v20 }
 0x102   :  { %v148_v24 = vmul.f32 %v146_v22, %v140_v20  ;;  %v145_v25 = vmul.f32 %v135_v23, %v135_v23  ;;  %v143_v37 = vmul.f32 0.5, %v135_v23 }
 0x104   :  { %v150_v26 = vmul.f32 0.044715, %v148_v24  ;;  %v147_v27 = vmul.f32 %v145_v25, %v135_v23 }
 0x106   :  { %v152_v28 = vadd.f32 %v150_v26, %v140_v20  ;;  %v149_v29 = vmul.f32 0.044715, %v147_v27 }
 0x108   :  { %v154_v30 = vmul.f32 0.7978846, %v152_v28  ;;  %v151_v31 = vadd.f32 %v149_v29, %v135_v23 }
 0x10a   :  { %240 = vtanh.f32 %v154_v30  ;;  %v153_v32 = vmul.f32 0.7978846, %v151_v31 }
 0x10c   :  { %242 = vtanh.f32 %v153_v32 }
 0x117   :  { %v241_v33 = vpop.eup %240 }
 0x118   :  { %v158_v35 = vadd.f32 1.0, %v241_v33 }
 0x119   :  { %v243_v36 = vpop.eup %242 }
 0x11a   :  { %v157_v38 = vadd.f32 1.0, %v243_v36  ;;  %v160_v39 = vmul.f32 %v158_v35, %v144_v34 }
 0x11c   :  { %v159_v40 = vmul.f32 %v157_v38, %v143_v37  ;;  %162 = vst [vmem:[#allocation7 + $0x8] sm:$0xff] %v160_v39 }
 0x11e   :  { %161 = vst [vmem:[#allocation7] sm:$0xff] %v159_v40 }
 0x11f   :  { %295 = shalt.err (!%p292_p0)
}
 0x120   :  { %174 = dma.vmem_to_hbm [thread:$0]  %s169_s24, 256, %s359_s3, [#allocation4], %s311_s15, %s311_s15, %s312_s16  }
 0x121   :  { %308 = dma.done.wait [#allocation4], 256  }
 0x122   :  { %309 = vsyncadd [#allocation4], 4294967040 }
 0x123   :  { %178 = vsyncpa [#allocation3], 1 }
 0x124   :  { %179 = vsyncpa [#allocation6], 1 }
 0x125   :  { %180 = vsyncpa [#allocation4], 1 }

</bundles_post_ra>
